<compile_context>
chip_gen: v6e
topology: v6e:2x2x1
jax: 0.10.0
libtpu: 0.0.40
codegen_flags: <defaults>
</compile_context>

<pallas_src>
import functools

import jax
import jax.numpy as jnp
from jax import lax
from jax.experimental import pallas as pl
from jax.experimental.pallas import tpu as pltpu

_LANES = 128
_SUBLANES = 8
# ~512 KiB per f32 input tile (1024 rows x 128 lanes).
_TARGET_TILE_ELEMS = 1024 * _LANES
# Leading "parallel" grid axis: 2 TensorCores on v7x, harmless elsewhere.
_N_SPLITS = 2


def _silog_partial_kernel(est_ref, gt_ref,
                          sum_d_ref, sum_d2_ref, cnt_ref,
                          acc_d_ref, acc_d2_ref, acc_cnt_ref,
                          *, tile_rows, cols, rows_total, blocks_per_split):
    """One grid step: masked elementwise partials for a (tile_rows, cols) block."""
    c = pl.program_id(0)   # parallel split (TensorCore on v7x)
    i = pl.program_id(1)   # reduction step within the split

    # Start of each split's reduction sweep: zero the tile-shaped partial
    # accumulators (and the resident output blocks, cheap insurance).
    @pl.when(i == 0)
    def _():
        acc_d_ref[...] = jnp.zeros_like(acc_d_ref)
        acc_d2_ref[...] = jnp.zeros_like(acc_d2_ref)
        acc_cnt_ref[...] = jnp.zeros_like(acc_cnt_ref)
        sum_d_ref[...] = jnp.zeros_like(sum_d_ref)
        sum_d2_ref[...] = jnp.zeros_like(sum_d2_ref)
        cnt_ref[...] = jnp.zeros_like(cnt_ref)

    est = est_ref[...]
    gt = gt_ref[...]

    # Global (unclamped) row index of this block.  Rows at/past rows_total are
    # either the ragged tail of a partial last block or the clamped duplicate
    # block of the second split's overflow iteration; both must be masked
    # explicitly (OOB block contents are unspecified).
    row_start = (c * blocks_per_split + i) * tile_rows
    row_ids = row_start + lax.broadcasted_iota(jnp.int32, (tile_rows, cols), 0)
    valid = (row_ids < rows_total) & (gt > 0.01)

    # Guard the log arguments so masked (possibly garbage / non-positive)
    # entries can never produce NaN/Inf that would leak through arithmetic.
    safe_est = jnp.where(valid, est, 1.0)
    safe_gt = jnp.where(valid, gt, 1.0)
    d = jnp.log(safe_est) - jnp.log(safe_gt)
    d = jnp.where(valid, d, 0.0)

    # Elementwise (VPU-only) accumulation into tile-shaped partials.
    acc_d_ref[...] += d
    acc_d2_ref[...] += d * d
    acc_cnt_ref[...] += valid.astype(jnp.float32)

    # Final step of this split: single cross-lane reduce + scalar writeback.
    @pl.when(i == pl.num_programs(1) - 1)
    def _():
        sum_d_ref[...] = jnp.broadcast_to(jnp.sum(acc_d_ref[...]), sum_d_ref.shape)
        sum_d2_ref[...] = jnp.broadcast_to(jnp.sum(acc_d2_ref[...]), sum_d2_ref.shape)
        cnt_ref[...] = jnp.broadcast_to(jnp.sum(acc_cnt_ref[...]), cnt_ref.shape)


def _as_2d_view(x):
    """Copy-free 2D view of a contiguous array (no padded copies in HBM)."""
    n = x.size
    if n % _LANES == 0:
        return x.reshape(n // _LANES, _LANES)      # lane-dense view
    return x.reshape(-1, x.shape[-1])              # natural (rows, last_dim) view


@functools.partial(jax.jit, static_argnames=("variance_focus", "block_rows"))
def silog_loss(depth_est, depth_gt, variance_focus=0.85, *, block_rows=None):
    """Pallas implementation of silog_loss.forward (NCHW or any layout)."""
    assert depth_est.shape == depth_gt.shape

    est2d = _as_2d_view(depth_est.astype(jnp.float32))
    gt2d = _as_2d_view(depth_gt.astype(jnp.float32))
    rows, cols = est2d.shape

    # Block rows: a multiple of 8 (TPU sublane tiling), or the full row extent
    # for small inputs.  The lane dim always covers the full column extent.
    if block_rows is None:
        block_rows = _TARGET_TILE_ELEMS // cols
    tile_rows = max(_SUBLANES, (block_rows // _SUBLANES) * _SUBLANES)
    tile_rows = min(tile_rows, rows)

    num_blocks = pl.cdiv(rows, tile_rows)
    bpc = pl.cdiv(num_blocks, _N_SPLITS)           # row-blocks per split

    def data_idx(c, i):
        # Clamp so the (at most one) overflow iteration of the last split
        # re-reads a valid block; its contribution is zeroed by the row mask.
        return (jnp.minimum(c * bpc + i, num_blocks - 1), 0)

    data_spec = pl.BlockSpec((tile_rows, cols), data_idx)
    # Per-split partial sums: (splits, 8, 128) so the last two block dims are
    # (8, 128)-aligned; the scalar lives in [c, 0, 0].
    part_spec = pl.BlockSpec((1, _SUBLANES, _LANES), lambda c, i: (c, 0, 0))
    part_shape = jax.ShapeDtypeStruct((_N_SPLITS, _SUBLANES, _LANES), jnp.float32)

    kernel = functools.partial(
        _silog_partial_kernel,
        tile_rows=tile_rows, cols=cols, rows_total=rows, blocks_per_split=bpc)

    sum_d, sum_d2, cnt = pl.pallas_call(
        kernel,
        out_shape=(part_shape, part_shape, part_shape),
        grid_spec=pltpu.PrefetchScalarGridSpec(
            num_scalar_prefetch=0,
            grid=(_N_SPLITS, bpc),
            in_specs=[data_spec, data_spec],
            out_specs=[part_spec, part_spec, part_spec],
            scratch_shapes=[pltpu.VMEM((tile_rows, cols), jnp.float32)] * 3,
        ),
        compiler_params=pltpu.CompilerParams(
            dimension_semantics=("parallel", "arbitrary"),
            vmem_limit_bytes=32 * 1024 * 1024),
    )(est2d, gt2d)

    # Tiny scalar epilogue in plain JAX (matches the PyTorch forward; NaN when
    # no gt pixel exceeds 0.01, same as the reference).
    total_cnt = jnp.sum(cnt[:, 0, 0])
    mean_d = jnp.sum(sum_d[:, 0, 0]) / total_cnt
    mean_d2 = jnp.sum(sum_d2[:, 0, 0]) / total_cnt
    return jnp.sqrt(mean_d2 - variance_focus * mean_d * mean_d) * 10.0


def _reference_silog(depth_est, depth_gt, variance_focus):
    """Pure-JAX reference mirroring the PyTorch forward."""
    mask = depth_gt > 0.01
    safe_est = jnp.where(mask, depth_est, 1.0)
    safe_gt = jnp.where(mask, depth_gt, 1.0)
    d = jnp.where(mask, jnp.log(safe_est) - jnp.log(safe_gt), 0.0)
    cnt = jnp.sum(mask)
    mean_d = jnp.sum(d) / cnt
    mean_d2 = jnp.sum(d * d) / cnt
    return jnp.sqrt(mean_d2 - variance_focus * mean_d ** 2) * 10.0


if __name__ == "__main__":
    key = jax.random.PRNGKey(0)
    k1, k2, k3, k4 = jax.random.split(key, 4)
    variance_focus = 0.85

    # Case 1: NCHW depth maps whose element count is a multiple of 128
    # (lane-dense 2D view path).
    B, C, H, W = 2, 1, 16, 16
    est1 = jax.random.uniform(k1, (B, C, H, W), jnp.float32, minval=0.1, maxval=5.0)
    # Some ground-truth pixels fall below 0.01 so the mask is non-trivial.
    gt1 = jax.random.uniform(k2, (B, C, H, W), jnp.float32, minval=0.0, maxval=5.0)
    out1 = jax.block_until_ready(silog_loss(est1, gt1, variance_focus=variance_focus))
    ref1 = _reference_silog(est1, gt1, variance_focus)
    assert jnp.allclose(out1, ref1, rtol=1e-4, atol=1e-5), (out1, ref1)

    # Case 2: ragged shape (not a multiple of 128) with a small forced block
    # size, exercising the fallback view, the partial-last-block row mask and
    # the 2-way split's clamped overflow iteration.
    est2 = jax.random.uniform(k3, (1, 1, 18, 17), jnp.float32, minval=0.1, maxval=5.0)
    gt2 = jax.random.uniform(k4, (1, 1, 18, 17), jnp.float32, minval=0.0, maxval=5.0)
    out2 = jax.block_until_ready(
        silog_loss(est2, gt2, variance_focus=variance_focus, block_rows=8))
    ref2 = _reference_silog(est2, gt2, variance_focus)
    assert jnp.allclose(out2, ref2, rtol=1e-4, atol=1e-5), (out2, ref2)

    print("KERNEL_OK")
</pallas_src>

<mosaic_0001>
module attributes {stable_mosaic.version = 11 : i64} {
  func.func @_silog_partial_kernel(%arg0: i32, %arg1: i32, %arg2: memref<4x128xf32, #tpu.memory_space<vmem>>, %arg3: memref<4x128xf32, #tpu.memory_space<vmem>>, %arg4: memref<1x8x128xf32, #tpu.memory_space<vmem>>, %arg5: memref<1x8x128xf32, #tpu.memory_space<vmem>>, %arg6: memref<1x8x128xf32, #tpu.memory_space<vmem>>, %arg7: memref<4x128xf32, #tpu.memory_space<vmem>>, %arg8: memref<4x128xf32, #tpu.memory_space<vmem>>, %arg9: memref<4x128xf32, #tpu.memory_space<vmem>>) attributes {dimension_semantics = [#tpu.dimension_semantics<parallel>, #tpu.dimension_semantics<arbitrary>], iteration_bounds = array<i64: 2, 1>, scalar_prefetch = 0 : i64, scratch_operands = 3 : i64, tpu.core_type = #tpu.core_type<tc>, window_params = [{transform_indices = @transform_0, window_bounds = array<i64: 4, 128>}, {transform_indices = @transform_1, window_bounds = array<i64: 4, 128>}, {transform_indices = @transform_2, window_bounds = array<i64: 1, 8, 128>}, {transform_indices = @transform_3, window_bounds = array<i64: 1, 8, 128>}, {transform_indices = @transform_4, window_bounds = array<i64: 1, 8, 128>}]} {
    %c0_i32 = arith.constant 0 : i32
    %0 = arith.cmpi eq, %arg1, %c0_i32 : i32
    %1 = arith.extui %0 : i1 to i32
    %c0_i32_0 = arith.constant 0 : i32
    %2 = arith.cmpi ne, %1, %c0_i32_0 : i32
    scf.if %2 {
      %cst_22 = arith.constant 0.000000e+00 : f32
      %40 = vector.broadcast %cst_22 : f32 to vector<4x128xf32>
      %c0_23 = arith.constant 0 : index
      %c0_24 = arith.constant 0 : index
      %41 = vector.load %arg7[%c0_23, %c0_24] : memref<4x128xf32, #tpu.memory_space<vmem>>, vector<4x128xf32>
      tpu.vector_store %arg7[%c0_23, %c0_24], %40 {strides = array<i32>} : memref<4x128xf32, #tpu.memory_space<vmem>>, vector<4x128xf32>,
      %cst_25 = arith.constant 0.000000e+00 : f32
      %42 = vector.broadcast %cst_25 : f32 to vector<4x128xf32>
      %c0_26 = arith.constant 0 : index
      %c0_27 = arith.constant 0 : index
      %43 = vector.load %arg8[%c0_26, %c0_27] : memref<4x128xf32, #tpu.memory_space<vmem>>, vector<4x128xf32>
      tpu.vector_store %arg8[%c0_26, %c0_27], %42 {strides = array<i32>} : memref<4x128xf32, #tpu.memory_space<vmem>>, vector<4x128xf32>,
      %cst_28 = arith.constant 0.000000e+00 : f32
      %44 = vector.broadcast %cst_28 : f32 to vector<4x128xf32>
      %c0_29 = arith.constant 0 : index
      %c0_30 = arith.constant 0 : index
      %45 = vector.load %arg9[%c0_29, %c0_30] : memref<4x128xf32, #tpu.memory_space<vmem>>, vector<4x128xf32>
      tpu.vector_store %arg9[%c0_29, %c0_30], %44 {strides = array<i32>} : memref<4x128xf32, #tpu.memory_space<vmem>>, vector<4x128xf32>,
      %cst_31 = arith.constant 0.000000e+00 : f32
      %46 = vector.broadcast %cst_31 : f32 to vector<1x8x128xf32>
      %c0_32 = arith.constant 0 : index
      %c0_33 = arith.constant 0 : index
      %c0_34 = arith.constant 0 : index
      %47 = vector.load %arg4[%c0_32, %c0_33, %c0_34] : memref<1x8x128xf32, #tpu.memory_space<vmem>>, vector<1x8x128xf32>
      tpu.vector_store %arg4[%c0_32, %c0_33, %c0_34], %46 {strides = array<i32>} : memref<1x8x128xf32, #tpu.memory_space<vmem>>, vector<1x8x128xf32>,
      %cst_35 = arith.constant 0.000000e+00 : f32
      %48 = vector.broadcast %cst_35 : f32 to vector<1x8x128xf32>
      %c0_36 = arith.constant 0 : index
      %c0_37 = arith.constant 0 : index
      %c0_38 = arith.constant 0 : index
      %49 = vector.load %arg5[%c0_36, %c0_37, %c0_38] : memref<1x8x128xf32, #tpu.memory_space<vmem>>, vector<1x8x128xf32>
      tpu.vector_store %arg5[%c0_36, %c0_37, %c0_38], %48 {strides = array<i32>} : memref<1x8x128xf32, #tpu.memory_space<vmem>>, vector<1x8x128xf32>,
      %cst_39 = arith.constant 0.000000e+00 : f32
      %50 = vector.broadcast %cst_39 : f32 to vector<1x8x128xf32>
      %c0_40 = arith.constant 0 : index
      %c0_41 = arith.constant 0 : index
      %c0_42 = arith.constant 0 : index
      %51 = vector.load %arg6[%c0_40, %c0_41, %c0_42] : memref<1x8x128xf32, #tpu.memory_space<vmem>>, vector<1x8x128xf32>
      tpu.vector_store %arg6[%c0_40, %c0_41, %c0_42], %50 {strides = array<i32>} : memref<1x8x128xf32, #tpu.memory_space<vmem>>, vector<1x8x128xf32>,
    } else {
    }
    %c0 = arith.constant 0 : index
    %c0_1 = arith.constant 0 : index
    %3 = vector.load %arg2[%c0, %c0_1] : memref<4x128xf32, #tpu.memory_space<vmem>>, vector<4x128xf32>
    %c0_2 = arith.constant 0 : index
    %c0_3 = arith.constant 0 : index
    %4 = vector.load %arg3[%c0_2, %c0_3] : memref<4x128xf32, #tpu.memory_space<vmem>>, vector<4x128xf32>
    %c1_i32 = arith.constant 1 : i32
    %5 = arith.muli %arg0, %c1_i32 : i32
    %6 = arith.addi %5, %arg1 : i32
    %c4_i32 = arith.constant 4 : i32
    %7 = arith.muli %6, %c4_i32 : i32
    %8 = tpu.iota {dimensions = array<i32: 0>} : vector<4x128xi32>
    %9 = vector.broadcast %7 : i32 to vector<4x128xi32>
    %10 = arith.addi %9, %8 : vector<4x128xi32>
    %c4_i32_4 = arith.constant 4 : i32
    %11 = vector.broadcast %c4_i32_4 : i32 to vector<4x128xi32>
    %12 = arith.cmpi slt, %10, %11 : vector<4x128xi32>
    %cst = arith.constant 0.00999999977 : f32
    %13 = vector.broadcast %cst : f32 to vector<4x128xf32>
    %14 = arith.cmpf ogt, %4, %13 : vector<4x128xf32>
    %15 = arith.andi %12, %14 : vector<4x128xi1>
    %cst_5 = arith.constant 1.000000e+00 : f32
    %16 = vector.broadcast %cst_5 : f32 to vector<4x128xf32>
    %17 = arith.select %15, %3, %16 : vector<4x128xi1>, vector<4x128xf32>
    %cst_6 = arith.constant 1.000000e+00 : f32
    %18 = vector.broadcast %cst_6 : f32 to vector<4x128xf32>
    %19 = arith.select %15, %4, %18 : vector<4x128xi1>, vector<4x128xf32>
    %20 = math.log %17 : vector<4x128xf32>
    %21 = math.log %19 : vector<4x128xf32>
    %22 = arith.subf %20, %21 : vector<4x128xf32>
    %cst_7 = arith.constant 0.000000e+00 : f32
    %23 = vector.broadcast %cst_7 : f32 to vector<4x128xf32>
    %24 = arith.select %15, %22, %23 : vector<4x128xi1>, vector<4x128xf32>
    %c0_8 = arith.constant 0 : index
    %c0_9 = arith.constant 0 : index
    %25 = vector.load %arg7[%c0_8, %c0_9] : memref<4x128xf32, #tpu.memory_space<vmem>>, vector<4x128xf32>
    %26 = arith.addf %25, %24 : vector<4x128xf32>
    %c0_10 = arith.constant 0 : index
    %c0_11 = arith.constant 0 : index
    %27 = vector.load %arg7[%c0_10, %c0_11] : memref<4x128xf32, #tpu.memory_space<vmem>>, vector<4x128xf32>
    tpu.vector_store %arg7[%c0_10, %c0_11], %26 {strides = array<i32>} : memref<4x128xf32, #tpu.memory_space<vmem>>, vector<4x128xf32>,
    %c0_12 = arith.constant 0 : index
    %c0_13 = arith.constant 0 : index
    %28 = vector.load %arg8[%c0_12, %c0_13] : memref<4x128xf32, #tpu.memory_space<vmem>>, vector<4x128xf32>
    %29 = arith.mulf %24, %24 : vector<4x128xf32>
    %30 = arith.addf %28, %29 : vector<4x128xf32>
    %c0_14 = arith.constant 0 : index
    %c0_15 = arith.constant 0 : index
    %31 = vector.load %arg8[%c0_14, %c0_15] : memref<4x128xf32, #tpu.memory_space<vmem>>, vector<4x128xf32>
    tpu.vector_store %arg8[%c0_14, %c0_15], %30 {strides = array<i32>} : memref<4x128xf32, #tpu.memory_space<vmem>>, vector<4x128xf32>,
    %c0_16 = arith.constant 0 : index
    %c0_17 = arith.constant 0 : index
    %32 = vector.load %arg9[%c0_16, %c0_17] : memref<4x128xf32, #tpu.memory_space<vmem>>, vector<4x128xf32>
    %33 = arith.extui %15 : vector<4x128xi1> to vector<4x128xi32>
    %34 = arith.sitofp %33 : vector<4x128xi32> to vector<4x128xf32>
    %35 = arith.addf %32, %34 : vector<4x128xf32>
    %c0_18 = arith.constant 0 : index
    %c0_19 = arith.constant 0 : index
    %36 = vector.load %arg9[%c0_18, %c0_19] : memref<4x128xf32, #tpu.memory_space<vmem>>, vector<4x128xf32>
    tpu.vector_store %arg9[%c0_18, %c0_19], %35 {strides = array<i32>} : memref<4x128xf32, #tpu.memory_space<vmem>>, vector<4x128xf32>,
    %c0_i32_20 = arith.constant 0 : i32
    %37 = arith.cmpi eq, %arg1, %c0_i32_20 : i32
    %38 = arith.extui %37 : i1 to i32
    %c0_i32_21 = arith.constant 0 : i32
    %39 = arith.cmpi ne, %38, %c0_i32_21 : i32
    scf.if %39 {
      %c0_22 = arith.constant 0 : index
      %c0_23 = arith.constant 0 : index
      %40 = vector.load %arg7[%c0_22, %c0_23] : memref<4x128xf32, #tpu.memory_space<vmem>>, vector<4x128xf32>
      %41 = vector.shape_cast %40 : vector<4x128xf32> to vector<1x4x128xf32>
      %cst_24 = arith.constant dense<0.000000e+00> : vector<1xf32>
      %42 = vector.multi_reduction <add>, %41, %cst_24 [1, 2] : vector<1x4x128xf32> to vector<1xf32>
      %43 = vector.shape_cast %42 : vector<1xf32> to vector<1x1x1xf32>
      %44 = vector.extract %43[0, 0, 0] : f32 from vector<1x1x1xf32>
      %45 = vector.broadcast %44 : f32 to vector<1x8x128xf32>
      %c0_25 = arith.constant 0 : index
      %c0_26 = arith.constant 0 : index
      %c0_27 = arith.constant 0 : index
      %46 = vector.load %arg4[%c0_25, %c0_26, %c0_27] : memref<1x8x128xf32, #tpu.memory_space<vmem>>, vector<1x8x128xf32>
      tpu.vector_store %arg4[%c0_25, %c0_26, %c0_27], %45 {strides = array<i32>} : memref<1x8x128xf32, #tpu.memory_space<vmem>>, vector<1x8x128xf32>,
      %c0_28 = arith.constant 0 : index
      %c0_29 = arith.constant 0 : index
      %47 = vector.load %arg8[%c0_28, %c0_29] : memref<4x128xf32, #tpu.memory_space<vmem>>, vector<4x128xf32>
      %48 = vector.shape_cast %47 : vector<4x128xf32> to vector<1x4x128xf32>
      %cst_30 = arith.constant dense<0.000000e+00> : vector<1xf32>
      %49 = vector.multi_reduction <add>, %48, %cst_30 [1, 2] : vector<1x4x128xf32> to vector<1xf32>
      %50 = vector.shape_cast %49 : vector<1xf32> to vector<1x1x1xf32>
      %51 = vector.extract %50[0, 0, 0] : f32 from vector<1x1x1xf32>
      %52 = vector.broadcast %51 : f32 to vector<1x8x128xf32>
      %c0_31 = arith.constant 0 : index
      %c0_32 = arith.constant 0 : index
      %c0_33 = arith.constant 0 : index
      %53 = vector.load %arg5[%c0_31, %c0_32, %c0_33] : memref<1x8x128xf32, #tpu.memory_space<vmem>>, vector<1x8x128xf32>
      tpu.vector_store %arg5[%c0_31, %c0_32, %c0_33], %52 {strides = array<i32>} : memref<1x8x128xf32, #tpu.memory_space<vmem>>, vector<1x8x128xf32>,
      %c0_34 = arith.constant 0 : index
      %c0_35 = arith.constant 0 : index
      %54 = vector.load %arg9[%c0_34, %c0_35] : memref<4x128xf32, #tpu.memory_space<vmem>>, vector<4x128xf32>
      %55 = vector.shape_cast %54 : vector<4x128xf32> to vector<1x4x128xf32>
      %cst_36 = arith.constant dense<0.000000e+00> : vector<1xf32>
      %56 = vector.multi_reduction <add>, %55, %cst_36 [1, 2] : vector<1x4x128xf32> to vector<1xf32>
      %57 = vector.shape_cast %56 : vector<1xf32> to vector<1x1x1xf32>
      %58 = vector.extract %57[0, 0, 0] : f32 from vector<1x1x1xf32>
      %59 = vector.broadcast %58 : f32 to vector<1x8x128xf32>
      %c0_37 = arith.constant 0 : index
      %c0_38 = arith.constant 0 : index
      %c0_39 = arith.constant 0 : index
      %60 = vector.load %arg6[%c0_37, %c0_38, %c0_39] : memref<1x8x128xf32, #tpu.memory_space<vmem>>, vector<1x8x128xf32>
      tpu.vector_store %arg6[%c0_37, %c0_38, %c0_39], %59 {strides = array<i32>} : memref<1x8x128xf32, #tpu.memory_space<vmem>>, vector<1x8x128xf32>,
    } else {
    }
    return
  }
  func.func @transform_0(%arg0: i32, %arg1: i32) -> (i32, i32) {
    %c1_i32 = arith.constant 1 : i32
    %0 = arith.muli %arg0, %c1_i32 : i32
    %1 = arith.addi %0, %arg1 : i32
    %c0_i32 = arith.constant 0 : i32
    %2 = arith.minsi %1, %c0_i32 : i32
    %c0_i32_0 = arith.constant 0 : i32
    %c0_i32_1 = arith.constant 0 : i32
    return %2, %c0_i32_0 : i32, i32
  }
  func.func @transform_1(%arg0: i32, %arg1: i32) -> (i32, i32) {
    %c1_i32 = arith.constant 1 : i32
    %0 = arith.muli %arg0, %c1_i32 : i32
    %1 = arith.addi %0, %arg1 : i32
    %c0_i32 = arith.constant 0 : i32
    %2 = arith.minsi %1, %c0_i32 : i32
    %c0_i32_0 = arith.constant 0 : i32
    %c0_i32_1 = arith.constant 0 : i32
    return %2, %c0_i32_0 : i32, i32
  }
  func.func @transform_2(%arg0: i32, %arg1: i32) -> (i32, i32, i32) {
    %c0_i32 = arith.constant 0 : i32
    %c0_i32_0 = arith.constant 0 : i32
    %c0_i32_1 = arith.constant 0 : i32
    return %arg0, %c0_i32, %c0_i32_0 : i32, i32, i32
  }
  func.func @transform_3(%arg0: i32, %arg1: i32) -> (i32, i32, i32) {
    %c0_i32 = arith.constant 0 : i32
    %c0_i32_0 = arith.constant 0 : i32
    %c0_i32_1 = arith.constant 0 : i32
    return %arg0, %c0_i32, %c0_i32_0 : i32, i32, i32
  }
  func.func @transform_4(%arg0: i32, %arg1: i32) -> (i32, i32, i32) {
    %c0_i32 = arith.constant 0 : i32
    %c0_i32_0 = arith.constant 0 : i32
    %c0_i32_1 = arith.constant 0 : i32
    return %arg0, %c0_i32, %c0_i32_0 : i32, i32, i32
  }
}

</mosaic_0001>

<bundles_post_ra>
// kernel: silog_loss.1
= control target key start
LH: loop header
LB: loop body
LE: loop exit
PB: predicated region body
PF: predicated region fallthrough
CT: control target
= control target key end

     0   :  { %s609_s15 = smov 0   ;;  %s611_s16 = smov 0   ;;  %s673_s0 = inlined_call_operand.vmem [shape: f32[4,128], index: 0, kind: input, shape index: {}]   ;;  %s674_s1 = inlined_call_operand.vmem [shape: f32[4,128], index: 1, kind: input, shape index: {}]   ;;  %s675_s2 = inlined_call_operand.vmem [shape: f32[2,8,128], index: 2, kind: output, shape index: {0}]   ;;  %s676_s3 = inlined_call_operand.vmem [shape: f32[2,8,128], index: 3, kind: output, shape index: {1}]   ;;  %s677_s4 = inlined_call_operand.vmem [shape: f32[2,8,128], index: 4, kind: output, shape index: {2}]  }
   0x1   :  { %s613_s17 = smov 0  }
   0x2 LB: > { %s27_s18 = sadd.s32 1, %s577_s16  ;;  %p508_p0 = scmp.ge.s32.totalorder %s581_s17, 1  ;;  %s581_s17 = sphi %s613_s17, %s15_s17   ;;  %s577_s16 = sphi %s611_s16, %s681_s16   ;;  %s573_s15 = sphi %s609_s15, %s680_s15  }
   0x3   : > { %p29_p1 = scmp.ge.s32.totalorder %s27_s18, 2  ;;  %p211_p2 = scmp.lt.s32.totalorder %s581_s17, 3 }
   0x5   : > { %s683_s18 = smov (%p29_p1, %s27_s18), 0  ;;  %p212_p3 = pnand %p508_p0, %p211_p2 }
   0x6   : > { %p254_p4 = scmp.lt.s32.totalorder (!%p212_p3), %s573_s15, 0  ;;  %s520_s19 = sshll.u32 (!%p212_p3), %s573_s15, 2 }
   0x7   : > { %215 = sbr.rel (%p212_p3) target bundleno = 259 (0x103), region = 28  ;;  %p273_p5 = scmp.lt.s32.totalorder (!%p212_p3), %s573_s15, 1 }
   0xc   : > { %v299_v0 = vlaneseq  ;;  %v583_v1 = vmov 0.0   ;;  %v301_v2 = vstv %s520_s19  ;;  %s255_s20 = scalar_select %p254_p4, %s573_s15, 0  ;;  %vm330_vm3 = vcmask 1043456  }
   0xd   : > { %291 = vst [vmem:[#allocation4] sm:$0xf] %v583_v1  ;;  %289 = vst [vmem:[#allocation2] sm:$0xf] %v583_v1  ;;  %s687_s15 = smov (!%p273_p5, %s573_s15), 1 }
   0xe   : > { %290 = vst [vmem:[#allocation3] sm:$0xf] %v583_v1  ;;  %v300_v3 = vshrl.u32 %v299_v0, 7  ;;  %s685_s20 = smov (!%p254_p4, %s255_s20), 0  ;;  %s517_s28 = sshll.u32 %s687_s15, 3 }
   0xf   : > { %s512_s21 = sshll.u32 %s685_s20, 2  ;;  %s276_s5 = scalar_lea.vmem %s675_s2, %s517_s28 }
  0x10   : > { %v302_v4 = vadd.s32 %v301_v2, %v300_v3  ;;  %s269_s24 = scalar_lea.vmem %s674_s1, %s512_s21  ;;  %s259_s27 = scalar_lea.vmem %s673_s0, %s512_s21 }
  0x11   : > { %v296_v5 = vld [vmem:[%s269_s24] sm:$0xf]  ;;  %s280_s9 = scalar_lea.vmem %s676_s3, %s517_s28  ;;  %s284_s13 = scalar_lea.vmem %s677_s4, %s517_s28 }
  0x12   : > { %vm303_vm0 = vcmp.lt.s32.totalorder %v302_v4, 4  ;;  %v295_v6 = vld [vmem:[%s259_s27] sm:$0xf]  ;;  %vm304_vm1 = vcmp.gt.f32.partialorder %v296_v5, 0.01 }
  0x13   : > { %vm638_vm2 = vmand %vm303_vm0, %vm304_vm1 }
  0x14   : > { %v321_v7 = vld [vmem:[#allocation4] sm:$0xf]  ;;  %v521_v9 = vsel %vm638_vm2, 1.0, %v583_v1  ;;  %v307_v10 = vsel %vm638_vm2, %v296_v5, 1.0  ;;  %v306_v11 = vsel %vm638_vm2, %v295_v6, 1.0 }
  0x15   : > { %v324_v12 = vadd.f32 %v521_v9, %v321_v7  ;;  %555 = vlog2.f32 %v307_v10  ;;  %v314_v20 = vld [vmem:[#allocation2] sm:$0xf]  ;;  %v317_v22 = vld [vmem:[#allocation3] sm:$0xf] }
  0x16   : > { %557 = vlog2.f32 %v306_v11 }
  0x17   : > { %325 = vst [vmem:[#allocation4] sm:$0xf] %v324_v12 }
  0x1e   : > { %v356_v13 = vld [vmem:[#allocation4] sm:$0xf] }
  0x1f   : > { %v357_v14 = vsel %vm330_vm3, %v356_v13, 0.0 }
  0x20   : > { %358 = vadd.xlane.f32.xlu1 %v357_v14 }
  0x22   : > { %v556_v15 = vpop.eup %555 }
  0x23   : > { %v558_v16 = vpop.eup %557  ;;  %v311_v17 = vmul.f32 0.6931472, %v556_v15 }
  0x24   : > { %v309_v18 = vmul.f32 0.6931472, %v558_v16 }
  0x26   : > { %v312_v19 = vsub.f32 %v309_v18, %v311_v17 }
  0x28   : > { %v313_v21 = vsel %vm638_vm2, %v312_v19, 0.0 }
  0x29   : > { %v315_v23 = vadd.f32 %v314_v20, %v313_v21  ;;  %v318_v24 = vmul.f32 %v313_v21, %v313_v21 }
  0x2b   : > { %316 = vst [vmem:[#allocation2] sm:$0xf] %v315_v23  ;;  %v319_v25 = vadd.f32 %v318_v24, %v317_v22 }
  0x2d   : > { %320 = vst [vmem:[#allocation3] sm:$0xf] %v319_v25 }
  0x32   : > { %v329_v26 = vld [vmem:[#allocation2] sm:$0xf] }
  0x33   : > { %v331_v27 = vsel %vm330_vm3, %v329_v26, 0.0 }
  0x34   : > { %332 = vadd.xlane.f32.xlu0 %v331_v27  ;;  %v343_v28 = vld [vmem:[#allocation3] sm:$0xf] }
  0x35   : > { %v344_v29 = vsel %vm330_vm3, %v343_v28, 0.0 }
  0x38   : > { %345 = vadd.xlane.f32.xlu0 %v344_v29 }
  0xa9   : > { %v359_v30 = vpop.xlane.xlu1 %358 }
  0xaa   : > { %v360_v31 = vrot.slane %v359_v30, 4 }
  0xac   : > { %v361_v32 = vadd.f32 %v360_v31, %v359_v30 }
  0xae   : > { %v362_v36 = vrot.slane %v361_v32, 2 }
  0xb0   : > { %v363_v42 = vadd.f32 %v362_v36, %v361_v32 }
  0xb2   : > { %v364_v47 = vrot.slane %v363_v42, 1 }
  0xb4   : > { %v365_v50 = vadd.f32 %v364_v47, %v363_v42 }
  0xbd   : > { %v333_v33 = vpop.xlane.xlu0 %332 }
  0xbe   : > { %v334_v34 = vrot.slane %v333_v33, 4 }
  0xc0   : > { %v335_v35 = vadd.f32 %v334_v34, %v333_v33 }
  0xc1   : > { %v346_v37 = vpop.xlane.xlu0 %345 }
  0xc2   : > { %v336_v38 = vrot.slane %v335_v35, 2  ;;  %v347_v39 = vrot.slane %v346_v37, 4 }
  0xc4   : > { %v348_v40 = vadd.f32 %v347_v39, %v346_v37  ;;  %v337_v41 = vadd.f32 %v336_v38, %v335_v35 }
  0xc6   : > { %v349_v43 = vrot.slane %v348_v40, 2  ;;  %v338_v44 = vrot.slane %v337_v41, 1 }
  0xc8   : > { %v350_v45 = vadd.f32 %v349_v43, %v348_v40  ;;  %v339_v46 = vadd.f32 %v338_v44, %v337_v41 }
  0xca   : > { %524 = vpush %v339_v46  ;;  %v351_v48 = vrot.slane %v350_v45, 1 }
  0xcc   : > { %v352_v49 = vadd.f32 %v351_v48, %v350_v45 }
  0xce   : > { %526 = vpush %v352_v49 }
  0xcf   : > { %528 = vpush %v365_v50 }
  0xfb   : > { %s525_s6 = spop %524 }
  0xfc   : > { %v341_v51 = vstv %s525_s6 }
  0xfd   : > { %342 = vst [vmem:[%s276_s5] sm:$0xff] %v341_v51 }
  0xff   : > { %s527_s10 = spop %526 }
 0x100   : > { %v354_v52 = vstv %s527_s10  ;;  %s529_s14 = spop %528 }
 0x101   : > { %355 = vst [vmem:[%s280_s9] sm:$0xff] %v354_v52  ;;  %v367_v53 = vstv %s529_s14 }
 0x102   : > { %368 = vst [vmem:[%s284_s13] sm:$0xff] %v367_v53 }
 0x103 PF: > { %s15_s17 = sadd.s32 1, %s581_s17   ;;  %s680_s15 = smov %s577_s16 }
 0x104   : > { %p12_p6 = scmp.ge.s32.totalorder %s15_s17, 4   ;;  %s681_s16 = smov %s683_s18 }
 0x106   :  { %14 = sbr.rel (!%p12_p6) target bundleno = 2 (0x2), region = 93 }

</bundles_post_ra>
